<compile_context>
chip_gen: v6e
topology: v6e:2x2x1
jax: 0.10.0
libtpu: 0.0.40
codegen_flags: <defaults>
</compile_context>

<pallas_src>
import math

import jax
import jax.numpy as jnp
from jax.experimental import pallas as pl
from jax.experimental.pallas import tpu as pltpu


def _sep_convt1d_kernel(x_ref, w_ref, base_ref, o_ref):
    # x_ref    : (C_in, W_pad)      zero-padded, lane-dense input chunk
    # w_ref    : (C_out, K * C_in)  fused per-tap channel-mixing weights
    # base_ref : (C_out, 1)         fused bias (f32)
    # o_ref    : (C_out, W_pad)
    C_in = x_ref.shape[0]
    K = w_ref.shape[1] // C_in

    x = x_ref[...]  # load once, stays in vregs

    # NOTE (roll-as-zero-shift invariant): pltpu.roll follows jnp.roll
    # semantics -- shift=k moves data toward HIGHER lane indices, so column c of
    # the rolled array holds x[:, c-k].  Every L_seg segment inside the chunk
    # ends in >= K-1 zero lanes and the chunk width is an exact multiple of
    # L_seg, so the circular wrap-around only ever carries zeros.  Do not change
    # the wrapper-side padding without revisiting this.
    if K > 1:
        rows = [x] + [pltpu.roll(x, shift=k, axis=1) for k in range(1, K)]
        xs = jnp.concatenate(rows, axis=0)            # (K*C_in, W_pad)
    else:
        xs = x

    # Single MXU matmul, f32 accumulation; bias add + cast as epilogue.
    acc = jnp.dot(w_ref[...], xs, preferred_element_type=jnp.float32)
    o_ref[...] = (acc + base_ref[...]).astype(o_ref.dtype)


def _xla_fallback(x, w_depth, b_depth, w_point, b_point):
    """Plain-XLA path for tiny problems where kernel launch overhead dominates."""
    N, C_in, L_in = x.shape
    K = w_depth.shape[1]
    L_out = L_in + K - 1
    xf = x.astype(jnp.float32)
    z = jnp.zeros((N, C_in, L_out), jnp.float32)
    for k in range(K):
        z = z.at[:, :, k:k + L_in].add(xf * w_depth[None, :, k:k + 1].astype(jnp.float32))
    z = z + b_depth[None, :, None].astype(jnp.float32)
    out = jnp.einsum('ncl,cd->ndl', z, w_point.astype(jnp.float32))
    out = out + b_point[None, :, None].astype(jnp.float32)
    return out.astype(x.dtype)


def separable_conv_transpose1d(x, w_depth, b_depth, w_point, b_point, *,
                               batch_chunk=None, use_pallas=None,
                               channels_leading=False):
    """x: (N, C_in, L_in) (or (C_in, N, L_in) if channels_leading=True, which
       skips one HBM transpose copy); w_depth: (C_in, 1, K) or (C_in, K);
       b_depth: (C_in,); w_point: (C_in, C_out, 1) or (C_in, C_out);
       b_point: (C_out,).  Returns (N, C_out, L_out) with L_out = L_in + K - 1
       (stride=1, padding=0 ConvTranspose1d defaults)."""
    if channels_leading:
        C_in, N, L_in = x.shape
    else:
        N, C_in, L_in = x.shape
    w_depth = w_depth.reshape(C_in, -1)
    w_point = w_point.reshape(C_in, -1)
    K = w_depth.shape[1]
    C_out = w_point.shape[1]
    L_out = L_in + K - 1

    if use_pallas is None:
        use_pallas = N * L_out >= 1024  # tiny problems: XLA fuses this faster
    if not use_pallas:
        x_nc = jnp.transpose(x, (1, 0, 2)) if channels_leading else x
        return _xla_fallback(x_nc, w_depth, b_depth, w_point, b_point)

    # ---- host-side weight/bias fusion (tiny, f32; cast fused weights last) ---
    wp32 = w_point.astype(jnp.float32)                         # (C_in, C_out)
    wd32 = w_depth.astype(jnp.float32)                         # (C_in, K)
    # w_fused[co, k*C_in + ci] = w_point[ci, co] * w_depth[ci, k]
    w_fused = (wp32.T[:, None, :] * wd32.T[None, :, :]).reshape(C_out, K * C_in)
    w_fused = w_fused.astype(x.dtype)
    # base[co] = sum_ci w_point[ci, co] * b_depth[ci] + b_point[co]
    base = (wp32.T @ b_depth.astype(jnp.float32).reshape(C_in, 1)
            + b_point.astype(jnp.float32).reshape(C_out, 1))    # (C_out, 1), f32

    # ---- chunk sizing --------------------------------------------------------
    if batch_chunk is None:
        # Power-of-two chunk sizes keep the per-segment lane padding (needed so
        # batch_chunk * L_seg is a multiple of 128) below one vreg column/chunk.
        bc = 1
        target_lanes = 2048           # mem-bound: >=2048 lanes/step ~ HBM roofline
        while bc < N and bc * L_out < target_lanes:
            bc *= 2
        # v7x megacore: with enough total work keep >= 2 "parallel" chunks so the
        # grid shards across both TensorCores (each chunk still >= ~1024 lanes).
        while bc > 1 and -(-N // bc) < 2 and N * L_out >= 2 * 1024:
            bc //= 2
        batch_chunk = bc
    batch_chunk = max(1, min(batch_chunk, N))

    in_bytes = jnp.dtype(x.dtype).itemsize

    def _lane_geom(bc):
        # Smallest per-segment length L_seg >= L_out with bc * L_seg % 128 == 0.
        g = 128 // math.gcd(bc, 128)
        l_seg = -(-L_out // g) * g
        return l_seg, bc * l_seg

    def _step_vmem_bytes(w_pad):
        # double-buffered in/out blocks + stacked RHS + f32 accumulator
        return ((2 * C_in + K * C_in) * in_bytes
                + 2 * C_out * in_bytes + C_out * 4) * w_pad

    VMEM_BUDGET = 8 << 20  # conservative: fits every generation's scoped VMEM
    L_seg, W_pad = _lane_geom(batch_chunk)
    while batch_chunk > 1 and _step_vmem_bytes(W_pad) > VMEM_BUDGET:
        batch_chunk //= 2
        L_seg, W_pad = _lane_geom(batch_chunk)

    num_chunks = -(-N // batch_chunk)
    N_pad = num_chunks * batch_chunk

    # Padding invariant required by the in-kernel circular-roll trick.
    assert L_seg >= L_in + (K - 1) and W_pad % 128 == 0 and W_pad == batch_chunk * L_seg

    # ---- layout: flatten (batch, length) onto a lane-dense axis --------------
    # Exactly ONE materialized pad (batch -> N_pad and per-segment L_in -> L_seg
    # together); the reshape is a contiguous row-major merge (no HBM copy).
    xt = x if channels_leading else jnp.transpose(x, (1, 0, 2))       # (C_in, N, L_in)
    xt = jnp.pad(xt, ((0, 0), (0, N_pad - N), (0, L_seg - L_in)))     # (C_in, N_pad, L_seg)
    x_flat = xt.reshape(C_in, num_chunks * W_pad)

    est = _step_vmem_bytes(W_pad) + (C_out * K * C_in + C_out) * 4
    vmem_limit = int(min(32 << 20, max(16 << 20, 2 * est)))

    out_flat = pl.pallas_call(
        _sep_convt1d_kernel,
        out_shape=jax.ShapeDtypeStruct((C_out, num_chunks * W_pad), x.dtype),
        grid_spec=pltpu.PrefetchScalarGridSpec(
            num_scalar_prefetch=0,
            grid=(num_chunks,),
            in_specs=[
                pl.BlockSpec((C_in, W_pad), lambda i: (0, i)),
                pl.BlockSpec((C_out, K * C_in), lambda i: (0, 0)),   # VMEM-resident
                pl.BlockSpec((C_out, 1), lambda i: (0, 0)),          # VMEM-resident
            ],
            out_specs=pl.BlockSpec((C_out, W_pad), lambda i: (0, i)),
        ),
        compiler_params=pltpu.CompilerParams(
            dimension_semantics=("parallel",),
            vmem_limit_bytes=vmem_limit),
    )(x_flat, w_fused, base)

    # Undo the layout plumbing (reshape is metadata; slice+transpose fuse in XLA).
    out = out_flat.reshape(C_out, N_pad, L_seg)[:, :N, :L_out]
    return jnp.transpose(out, (1, 0, 2))                              # (N, C_out, L_out)


def _reference(x, w_depth, b_depth, w_point, b_point):
    """Pure-JAX reference matching torch ConvTranspose1d semantics."""
    N, C_in, L_in = x.shape
    w_depth = w_depth.reshape(C_in, -1)
    w_point = w_point.reshape(C_in, -1)
    K = w_depth.shape[1]
    L_out = L_in + K - 1
    z = jnp.zeros((N, C_in, L_out), jnp.float32)
    xf = x.astype(jnp.float32)
    for k in range(K):
        z = z.at[:, :, k:k + L_in].add(xf * w_depth[None, :, k:k + 1].astype(jnp.float32))
    z = z + b_depth[None, :, None].astype(jnp.float32)
    out = jnp.einsum('ncl,cd->ndl', z, w_point.astype(jnp.float32),
                     precision=jax.lax.Precision.HIGHEST)
    return out + b_point[None, :, None].astype(jnp.float32)


if __name__ == "__main__":
    key = jax.random.PRNGKey(0)

    def make_params(k, C_in, C_out, K):
        k1, k2, k3, k4 = jax.random.split(k, 4)
        # Shapes match the torch module's parameters:
        #   depthwise ConvTranspose1d(C_in, C_in, K, groups=C_in): weight (C_in,1,K)
        #   pointwise ConvTranspose1d(C_in, C_out, 1):             weight (C_in,C_out,1)
        w_depth = 0.5 * jax.random.normal(k1, (C_in, 1, K), jnp.float32)
        b_depth = 0.1 * jax.random.normal(k2, (C_in,), jnp.float32)
        w_point = 0.5 * jax.random.normal(k3, (C_in, C_out, 1), jnp.float32)
        b_point = 0.1 * jax.random.normal(k4, (C_out,), jnp.float32)
        return w_depth, b_depth, w_point, b_point

    # --- config 1: module spec (input_c=4, output_c=8, kernel_size=3), small --
    N, C_in, C_out, L_in, K = 2, 4, 8, 16, 3
    kx, kp, key = jax.random.split(key, 3)
    x = jax.random.normal(kx, (N, C_in, L_in), dtype=jnp.float32)
    params = make_params(kp, C_in, C_out, K)

    out = separable_conv_transpose1d(x, *params, use_pallas=True)  # force kernel path
    out = jax.block_until_ready(out)
    ref = _reference(x, *params)
    assert out.shape == (N, C_out, L_in + K - 1), out.shape
    err = float(jnp.max(jnp.abs(out - ref)))
    assert jnp.allclose(out, ref, atol=1e-4, rtol=1e-4), err

    # --- config 2: larger batch -> multiple "parallel" chunks (megacore path) -
    N2, L2 = 64, 50
    kx2, kp2, key = jax.random.split(key, 3)
    x2 = jax.random.normal(kx2, (N2, C_in, L2), dtype=jnp.float32)
    params2 = make_params(kp2, C_in, C_out, K)
    out2 = jax.block_until_ready(separable_conv_transpose1d(x2, *params2))
    ref2 = _reference(x2, *params2)
    err2 = float(jnp.max(jnp.abs(out2 - ref2)))
    assert jnp.allclose(out2, ref2, atol=1e-4, rtol=1e-4), err2

    print("KERNEL_OK")
</pallas_src>

<mosaic_0001>
module attributes {stable_mosaic.version = 11 : i64} {
  func.func @_sep_convt1d_kernel(%arg0: i32, %arg1: memref<4x128xf32, #tpu.memory_space<vmem>>, %arg2: memref<8x12xf32, #tpu.memory_space<vmem>>, %arg3: memref<8x1xf32, #tpu.memory_space<vmem>>, %arg4: memref<8x128xf32, #tpu.memory_space<vmem>>) attributes {dimension_semantics = [#tpu.dimension_semantics<parallel>], iteration_bounds = array<i64: 1>, scalar_prefetch = 0 : i64, scratch_operands = 0 : i64, tpu.core_type = #tpu.core_type<tc>, window_params = [{transform_indices = @transform_0, window_bounds = array<i64: 4, 128>}, {pipeline_mode = #tpu.pipeline_mode<synchronous>, transform_indices = @transform_1, window_bounds = array<i64: 8, 12>}, {pipeline_mode = #tpu.pipeline_mode<synchronous>, transform_indices = @transform_2, window_bounds = array<i64: 8, 1>}, {transform_indices = @transform_3, window_bounds = array<i64: 8, 128>}]} {
    %c0 = arith.constant 0 : index
    %c0_0 = arith.constant 0 : index
    %0 = vector.load %arg1[%c0, %c0_0] : memref<4x128xf32, #tpu.memory_space<vmem>>, vector<4x128xf32>
    %c1_i32 = arith.constant 1 : i32
    %1 = tpu.dynamic_rotate %0 by %c1_i32 dim 1 : vector<4x128xf32>, i32 -> vector<4x128xf32>
    %c2_i32 = arith.constant 2 : i32
    %2 = tpu.dynamic_rotate %0 by %c2_i32 dim 1 : vector<4x128xf32>, i32 -> vector<4x128xf32>
    %3 = tpu.concatenate %0, %1, %2 in 0 : vector<4x128xf32>, vector<4x128xf32>, vector<4x128xf32> -> vector<12x128xf32>
    %c0_1 = arith.constant 0 : index
    %c0_2 = arith.constant 0 : index
    %4 = vector.load %arg2[%c0_1, %c0_2] : memref<8x12xf32, #tpu.memory_space<vmem>>, vector<8x12xf32>
    %cst = arith.constant dense<0.000000e+00> : vector<8x128xf32>
    %5 = tpu.matmul %4, %3, %cst {dimension_numbers = #tpu.dot_dimension_numbers<[1], [0], [0], [1], [0, 0, 1, 1], [], []>} : vector<8x12xf32>, vector<12x128xf32>, vector<8x128xf32> -> vector<8x128xf32>
    %c0_3 = arith.constant 0 : index
    %c0_4 = arith.constant 0 : index
    %6 = vector.load %arg3[%c0_3, %c0_4] : memref<8x1xf32, #tpu.memory_space<vmem>>, vector<8x1xf32>
    %7 = vector.broadcast %6 : vector<8x1xf32> to vector<8x128xf32>
    %8 = arith.addf %5, %7 : vector<8x128xf32>
    %c0_5 = arith.constant 0 : index
    %c0_6 = arith.constant 0 : index
    %9 = vector.load %arg4[%c0_5, %c0_6] : memref<8x128xf32, #tpu.memory_space<vmem>>, vector<8x128xf32>
    tpu.vector_store %arg4[%c0_5, %c0_6], %8 {strides = array<i32>} : memref<8x128xf32, #tpu.memory_space<vmem>>, vector<8x128xf32>,
    return
  }
  func.func @transform_0(%arg0: i32) -> (i32, i32) {
    %c0_i32 = arith.constant 0 : i32
    %c0_i32_0 = arith.constant 0 : i32
    return %c0_i32, %arg0 : i32, i32
  }
  func.func @transform_1(%arg0: i32) -> (i32, i32) {
    %c0_i32 = arith.constant 0 : i32
    %c0_i32_0 = arith.constant 0 : i32
    %c0_i32_1 = arith.constant 0 : i32
    return %c0_i32, %c0_i32_0 : i32, i32
  }
  func.func @transform_2(%arg0: i32) -> (i32, i32) {
    %c0_i32 = arith.constant 0 : i32
    %c0_i32_0 = arith.constant 0 : i32
    %c0_i32_1 = arith.constant 0 : i32
    return %c0_i32, %c0_i32_0 : i32, i32
  }
  func.func @transform_3(%arg0: i32) -> (i32, i32) {
    %c0_i32 = arith.constant 0 : i32
    %c0_i32_0 = arith.constant 0 : i32
    return %c0_i32, %arg0 : i32, i32
  }
}

</mosaic_0001>

<bundles_post_ra>
// kernel: tpu_custom_call.1
= control target key start
LH: loop header
LB: loop body
LE: loop exit
PB: predicated region body
PF: predicated region fallthrough
CT: control target
= control target key end

     0   :  { %8 = vsyncpa [#allocation3], 0  ;;  %s241_s0 = inlined_call_operand.hbm [shape: f32[4,128], index: 0, kind: input, shape index: {}]   ;;  %s242_s1 = inlined_call_operand.vmem [shape: f32[8,12], index: 1, kind: input, shape index: {}]   ;;  %s243_s2 = inlined_call_operand.vmem [shape: f32[8,1], index: 2, kind: input, shape index: {}]   ;;  %s244_s3 = inlined_call_operand.hbm [shape: f32[8,128], index: 3, kind: output, shape index: {}]  }
   0x1   :  { %9 = vsyncpa [#allocation4], 0  ;;  %s202_s12 = smov [#allocation2]  }
   0x2   :  { %s16_s13 = sshll.u32 %s202_s12, 4  ;;  %s17_s13 = int_to_ptr.vmem [resolvable:$true] %s16_s13 }
   0x3   :  { %s166_s14 = scalar_lea.vmem %s17_s13, 64  ;;  %p171_p1 = scmp.lt.s32.totalorder %s17_s13, %s17_s13 }
   0x4   :  { %p167_p0 = scmp.ne.s32.totalorder %s17_s13, %s166_s14  ;;  %p172_p2 = scmp.lt.s32.totalorder %s166_s14, %s166_s14 }
   0x6   :  { %p173_p3 = por %p172_p2, %p171_p1 }
   0x8   :  { %p174_p4 = pnand %p173_p3, %p167_p0 }
   0xa   :  { %177 = shalt.err (!%p174_p4)
}
   0xb   :  { %19 = dma.hbm_to_vmem [thread:$0]  %s241_s0, 64, %s17_s13, [#allocation3]  }
   0xc   :  { %198 = dma.done.wait [#allocation3], 64  }
   0xd   :  { %199 = vsyncadd [#allocation3], 4294967232  ;;  %v203_v0 = vmov 0.0   ;;  %vm204_vm0 = vmmov 0   ;;  %v205_v1 = vmov 0   ;;  %v38_v3 = vld [vmem:[%s243_s2] sm:$0xff] }
   0xe   :  { %142 = vmatprep.subr.mxu0 %v203_v0  ;;  %146 = vmatprep.mubr.msk.f32.mxu0 %vm204_vm0, %v203_v0  ;;  %v27_v2 = vld [vmem:[#allocation2] sm:$0xf]  ;;  %s206_s19 = smov 1   ;;  %s207_s20 = smov 2   ;;  %vm35_vm1 = vcmask 1043456   ;;  %vm44_vm2 = vcmask 97280  }
   0xf   :  { %156 = vset.pattern.permute.xlu1 %v205_v1  ;;  %157 = vset.pattern.permute.xlu0 %v205_v1  ;;  %v37_v7 = vld [vmem:[%s242_s1] sm:$0xff]  ;;  %s208_s2 = smov [#allocation5]  }
  0x10   :  { %28 = vrot.lane.b32.xlu0 %v27_v2, %s206_s19  ;;  %41 = vperm.xlu1 %156, %v38_v3   ;;  %s128_s22 = sshll.u32 %s208_s2, 4  ;;  %s129_s22 = int_to_ptr.vmem [resolvable:$true] %s128_s22 }
  0x11   :  { %s178_s23 = scalar_lea.vmem %s129_s22, 128  ;;  %p183_p6 = scmp.lt.s32.totalorder %s129_s22, %s129_s22 }
  0x12   :  { %p179_p5 = scmp.ne.s32.totalorder %s129_s22, %s178_s23  ;;  %p184_p7 = scmp.lt.s32.totalorder %s178_s23, %s178_s23 }
  0x14   :  { %30 = vrot.lane.b32.xlu0 %v27_v2, %s207_s20  ;;  %p185_p8 = por %p184_p7, %p183_p6 }
  0x16   :  { %p186_p9 = pnand %p185_p8, %p179_p5 }
  0x82   :  { %v29_v4 = vpop.permute.xlu0 %28 }
  0x83   :  { %v33_v5 = vrot.slane %v29_v4, 4 }
  0x85   :  { %v36_v8 = vsel %vm35_vm1, %v27_v2, %v33_v5 }
  0x86   :  { %v31_v6 = vpop.permute.xlu0 %30 }
  0x87   :  { %143 = vmatpush3.msk.msra.mxu0 %vm35_vm1, %v31_v6 }
  0x88   :  { %144 = vmatprep.subr.mxu0 %v203_v0 }
  0x89   :  { %145 = vmatpush3.msra.mxu0 %v36_v8 }
  0x8a   :  { %147 = vmatmul.mubr.msk.f32.vlgmr.msra.gmra.mxu0 %vm44_vm2, %v37_v7 }
  0x8b   :  { %v42_v9 = vpop.permute.xlu1 %41 }
 0x14a   :  { %v117_v10 = vpop.f32.mrf.mxu0 }
 0x14b   :  { %v118_v11 = vadd.f32 %v117_v10, %v42_v9 }
 0x14c   :  { %v148_v12 = vpop.f32.mrf.mxu0 }
 0x14d   :  { %121 = vst [vmem:[#allocation5] sm:$0xff] %v118_v11 }
 0x14e   :  { %189 = shalt.err (!%p186_p9)
}
 0x14f   :  { %131 = dma.vmem_to_hbm [thread:$0]  %s129_s22, 128, %s244_s3, [#allocation4]  }
 0x150   :  { %200 = dma.done.wait [#allocation4], 128  }
 0x151   :  { %201 = vsyncadd [#allocation4], 4294967168 }
 0x152   :  { %135 = vsyncpa [#allocation3], 1 }
 0x153   :  { %136 = vsyncpa [#allocation4], 1 }

</bundles_post_ra>
